<compile_context>
chip_gen: v5e
topology: v5e:2x2
jax: 0.10.0
libtpu: 0.0.40
codegen_flags: <defaults>
</compile_context>

<pallas_src>
import functools

import jax
import jax.numpy as jnp
from jax.experimental import pallas as pl
from jax.experimental.pallas import tpu as pltpu

# ---- synthetic "opt" config (module shapes) --------------------------------
BIT = 24                  # opt.bit
NUM_CLASS = 8             # opt.num_class
D_IN = BIT + NUM_CLASS    # 32
H1 = 512
H2 = 256
D_OUT = 1


def _round_up(x, m):
    return (x + m - 1) // m * m


def _cdiv(a, b):
    return (a + b - 1) // b


def _tpu_generation():
    """Best-effort TPU generation sniff (0 if unknown)."""
    try:
        kind = jax.devices()[0].device_kind.lower()
    except Exception:
        return 0
    for g in (7, 6, 5, 4, 3, 2):
        if f"v{g}" in kind:
            return g
    return 0


def _discriminator_kernel(x_ref, w1_ref, b1_ref, w2_ref, b2_ref, w3_ref,
                          b3_ref, o_ref, *, bf16_epilogue):
    """One batch tile of the whole MLP.

    bf16 MXU operands with f32 accumulation; the layer-1 epilogue (bias +
    LeakyReLU on the dominant (TB,512) block) runs in bf16 where the VPU has a
    bf16 path (v6e/v7x) and in f32 otherwise (v5e).
    """
    # Layer 1: Linear(D_IN, 512) + LeakyReLU(0.2)
    x = x_ref[...].astype(jnp.bfloat16)
    h1 = jnp.dot(x, w1_ref[...], preferred_element_type=jnp.float32)
    if bf16_epilogue:
        h1 = h1.astype(jnp.bfloat16) + b1_ref[...]        # bf16 bias add
        h1 = jnp.maximum(h1, 0.2 * h1)                    # bf16 LeakyReLU
    else:
        h1 = h1 + b1_ref[...]                             # f32 bias add
        h1 = jnp.maximum(h1, 0.2 * h1)                    # f32 LeakyReLU
        h1 = h1.astype(jnp.bfloat16)

    # Layer 2: Linear(512, 256) + LeakyReLU(0.2) (epilogue kept in f32)
    h2 = jnp.dot(h1, w2_ref[...], preferred_element_type=jnp.float32) + b2_ref[...]
    h2 = jnp.maximum(h2, 0.2 * h2)

    # Layer 3: Linear(256, 1) + Sigmoid, computed as w3_row (1,256) @ h2^T so
    # the result lands directly in a lane-dense (1, TB) row (no (TB,1) column
    # tile and no masked partial stores).
    logits = jax.lax.dot_general(
        w3_ref[...], h2, (((1,), (1,)), ((), ())),
        preferred_element_type=jnp.float32) + b3_ref[0]            # (1, TB)
    o_ref[...] = jax.nn.sigmoid(logits)[None].astype(o_ref.dtype)  # (1, 1, TB)


def discriminator_forward(img, params, tile_b=None, bf16_epilogue=None):
    """img: any shape with leading batch dim; flattened like img.view(B, -1)."""
    b = img.shape[0]
    x = img.reshape(b, -1).astype(jnp.float32)
    w1, b1, w2, b2, w3, b3 = params
    d_in, h1_dim = w1.shape
    h2_dim = w2.shape[1]
    assert x.shape[1] == d_in, f"expected flattened dim {d_in}, got {x.shape[1]}"

    gen = _tpu_generation()
    if bf16_epilogue is None:
        bf16_epilogue = gen >= 6            # v6e/v7x VPUs run bf16 natively
    if tile_b is None:
        tile_b = 2048 if gen >= 6 else 1024  # v5e is MXU-bound; stop earlier

    # Batch tile: multiple of 8 (sublanes), capped by tile_b and the batch.
    tb = _round_up(min(tile_b, _round_up(b, 8)), 8)
    n_tiles = _cdiv(b, tb)
    # v7x megacore: a large batch that would land in a single grid step leaves
    # one TensorCore idle — split into two "parallel" steps (harmless on 1-TC
    # chips at this size).
    if n_tiles == 1 and b >= 512:
        tb = _round_up(_cdiv(b, 2), 8)
        n_tiles = _cdiv(b, tb)

    # bf16 weights for the MXU (halves the one-time weight DMA).
    bias1_dtype = jnp.bfloat16 if bf16_epilogue else jnp.float32
    w1b = w1.astype(jnp.bfloat16)
    w2b = w2.astype(jnp.bfloat16)
    b1c = b1.reshape(1, h1_dim).astype(bias1_dtype)
    b2c = b2.reshape(1, h2_dim).astype(jnp.float32)
    w3_row = w3.reshape(1, h2_dim).astype(jnp.float32)   # layer-3 row, f32
    b3_s = b3.reshape(1).astype(jnp.float32)              # scalar in SMEM

    kernel = functools.partial(_discriminator_kernel, bf16_epilogue=bf16_epilogue)

    out = pl.pallas_call(
        kernel,
        # Lane-dense output: one (1, 1, TB) row per grid step.
        out_shape=jax.ShapeDtypeStruct((n_tiles, 1, tb), jnp.float32),
        grid=(n_tiles,),
        in_specs=[
            pl.BlockSpec((tb, d_in), lambda i: (i, 0)),          # x: batch-tiled
            pl.BlockSpec((d_in, h1_dim), lambda i: (0, 0)),      # w1: resident
            pl.BlockSpec((1, h1_dim), lambda i: (0, 0)),         # b1: resident
            pl.BlockSpec((h1_dim, h2_dim), lambda i: (0, 0)),    # w2: resident
            pl.BlockSpec((1, h2_dim), lambda i: (0, 0)),         # b2: resident
            pl.BlockSpec((1, h2_dim), lambda i: (0, 0)),         # w3 row: resident
            pl.BlockSpec(memory_space=pltpu.MemorySpace.SMEM),   # b3 scalar
        ],
        out_specs=pl.BlockSpec((1, 1, tb), lambda i: (i, 0, 0)),
        compiler_params=pltpu.CompilerParams(
            dimension_semantics=("parallel",)),
    )(x, w1b, b1c, w2b, b2c, w3_row, b3_s)

    # (n_tiles, 1, tb) -> (n_tiles*tb, 1); drop tail rows past the real batch.
    return out.reshape(n_tiles * tb, 1)[:b]


def init_params(key):
    """PyTorch-style uniform(-1/sqrt(fan_in), 1/sqrt(fan_in)) init (f32 master)."""
    ks = jax.random.split(key, 6)

    def lin(kw, kb, fan_in, fan_out):
        bound = 1.0 / jnp.sqrt(fan_in)
        w = jax.random.uniform(kw, (fan_in, fan_out), jnp.float32, -bound, bound)
        b = jax.random.uniform(kb, (1, fan_out), jnp.float32, -bound, bound)
        return w, b

    w1, b1 = lin(ks[0], ks[1], D_IN, H1)
    w2, b2 = lin(ks[2], ks[3], H1, H2)
    w3, b3 = lin(ks[4], ks[5], H2, D_OUT)
    return (w1, b1, w2, b2, w3, b3)


def reference_forward(img, params, bf16_epilogue):
    """Pure-JAX reference mirroring the kernel's mixed-precision recipe."""
    w1, b1, w2, b2, w3, b3 = params
    x = img.reshape(img.shape[0], -1).astype(jnp.float32)
    h1 = jnp.dot(x.astype(jnp.bfloat16), w1.astype(jnp.bfloat16),
                 preferred_element_type=jnp.float32)
    if bf16_epilogue:
        h1 = h1.astype(jnp.bfloat16) + b1.reshape(1, -1).astype(jnp.bfloat16)
        h1 = jnp.maximum(h1, 0.2 * h1)
    else:
        h1 = h1 + b1.reshape(1, -1)
        h1 = jnp.maximum(h1, 0.2 * h1)
        h1 = h1.astype(jnp.bfloat16)
    h2 = jnp.dot(h1, w2.astype(jnp.bfloat16),
                 preferred_element_type=jnp.float32) + b2.reshape(1, -1)
    h2 = jnp.maximum(h2, 0.2 * h2)
    logits = jnp.sum(h2 * w3.reshape(1, -1), axis=-1, keepdims=True) + b3.reshape(())
    return jax.nn.sigmoid(logits)


if __name__ == "__main__":
    key = jax.random.PRNGKey(0)
    k_param, k_x1, k_x2 = jax.random.split(key, 3)

    params = init_params(k_param)
    use_bf16 = _tpu_generation() >= 6

    # Small batch of "hash-code + class" vectors, shape (B, bit + num_class).
    img = jax.random.normal(k_x1, (8, D_IN), jnp.float32)
    out = jax.block_until_ready(discriminator_forward(img, params))
    ref = reference_forward(img, params, use_bf16)
    assert out.shape == (8, 1)
    assert jnp.allclose(out, ref, atol=2e-3, rtol=2e-3), "mismatch vs reference"

    # Non-multiple batch with a small tile: multi-step grid plus a partial
    # final input block (no wrapper-side padding anymore).
    img2 = jax.random.normal(k_x2, (40, D_IN), jnp.float32)
    out2 = jax.block_until_ready(discriminator_forward(img2, params, tile_b=16))
    ref2 = reference_forward(img2, params, use_bf16)
    assert out2.shape == (40, 1)
    assert jnp.allclose(out2, ref2, atol=2e-3, rtol=2e-3), "mismatch vs reference (tiled)"

    print("KERNEL_OK")
</pallas_src>

<mosaic_0001>
module attributes {stable_mosaic.version = 11 : i64} {
  func.func @_discriminator_kernel(%arg0: i32, %arg1: memref<8x32xf32, #tpu.memory_space<vmem>>, %arg2: memref<32x512xbf16, #tpu.memory_space<vmem>>, %arg3: memref<1x512xf32, #tpu.memory_space<vmem>>, %arg4: memref<512x256xbf16, #tpu.memory_space<vmem>>, %arg5: memref<1x256xf32, #tpu.memory_space<vmem>>, %arg6: memref<1x256xf32, #tpu.memory_space<vmem>>, %arg7: memref<1xf32, #tpu.memory_space<smem>>, %arg8: memref<1x1x8xf32, #tpu.memory_space<vmem>>) attributes {dimension_semantics = [#tpu.dimension_semantics<parallel>], iteration_bounds = array<i64: 1>, scalar_prefetch = 0 : i64, scratch_operands = 0 : i64, tpu.core_type = #tpu.core_type<tc>, window_params = [{transform_indices = @transform_0, window_bounds = array<i64: 8, 32>}, {pipeline_mode = #tpu.pipeline_mode<synchronous>, transform_indices = @transform_1, window_bounds = array<i64: 32, 512>}, {pipeline_mode = #tpu.pipeline_mode<synchronous>, transform_indices = @transform_2, window_bounds = array<i64: 1, 512>}, {pipeline_mode = #tpu.pipeline_mode<synchronous>, transform_indices = @transform_3, window_bounds = array<i64: 512, 256>}, {pipeline_mode = #tpu.pipeline_mode<synchronous>, transform_indices = @transform_4, window_bounds = array<i64: 1, 256>}, {pipeline_mode = #tpu.pipeline_mode<synchronous>, transform_indices = @transform_5, window_bounds = array<i64: 1, 256>}, {transform_indices = @transform_6, window_bounds = array<i64: 1>}, {transform_indices = @transform_7, window_bounds = array<i64: 1, 1, 8>}]} {
    %c0 = arith.constant 0 : index
    %c0_0 = arith.constant 0 : index
    %0 = vector.load %arg1[%c0, %c0_0] : memref<8x32xf32, #tpu.memory_space<vmem>>, vector<8x32xf32>
    %1 = arith.truncf %0 : vector<8x32xf32> to vector<8x32xbf16>
    %c0_1 = arith.constant 0 : index
    %c0_2 = arith.constant 0 : index
    %2 = vector.load %arg2[%c0_1, %c0_2] : memref<32x512xbf16, #tpu.memory_space<vmem>>, vector<32x512xbf16>
    %cst = arith.constant dense<0.000000e+00> : vector<8x512xf32>
    %3 = tpu.matmul %1, %2, %cst {dimension_numbers = #tpu.dot_dimension_numbers<[1], [0], [0], [1], [0, 0, 1, 1], [], []>} : vector<8x32xbf16>, vector<32x512xbf16>, vector<8x512xf32> -> vector<8x512xf32>
    %c0_3 = arith.constant 0 : index
    %c0_4 = arith.constant 0 : index
    %4 = vector.load %arg3[%c0_3, %c0_4] : memref<1x512xf32, #tpu.memory_space<vmem>>, vector<1x512xf32>
    %5 = vector.broadcast %4 : vector<1x512xf32> to vector<8x512xf32>
    %6 = arith.addf %3, %5 : vector<8x512xf32>
    %cst_5 = arith.constant 2.000000e-01 : f32
    %7 = vector.broadcast %cst_5 : f32 to vector<8x512xf32>
    %8 = arith.mulf %7, %6 : vector<8x512xf32>
    %9 = arith.maximumf %6, %8 : vector<8x512xf32>
    %10 = arith.truncf %9 : vector<8x512xf32> to vector<8x512xbf16>
    %c0_6 = arith.constant 0 : index
    %c0_7 = arith.constant 0 : index
    %11 = vector.load %arg4[%c0_6, %c0_7] : memref<512x256xbf16, #tpu.memory_space<vmem>>, vector<512x256xbf16>
    %cst_8 = arith.constant dense<0.000000e+00> : vector<8x256xf32>
    %12 = tpu.matmul %10, %11, %cst_8 {dimension_numbers = #tpu.dot_dimension_numbers<[1], [0], [0], [1], [0, 0, 1, 1], [], []>} : vector<8x512xbf16>, vector<512x256xbf16>, vector<8x256xf32> -> vector<8x256xf32>
    %c0_9 = arith.constant 0 : index
    %c0_10 = arith.constant 0 : index
    %13 = vector.load %arg5[%c0_9, %c0_10] : memref<1x256xf32, #tpu.memory_space<vmem>>, vector<1x256xf32>
    %14 = vector.broadcast %13 : vector<1x256xf32> to vector<8x256xf32>
    %15 = arith.addf %12, %14 : vector<8x256xf32>
    %cst_11 = arith.constant 2.000000e-01 : f32
    %16 = vector.broadcast %cst_11 : f32 to vector<8x256xf32>
    %17 = arith.mulf %16, %15 : vector<8x256xf32>
    %18 = arith.maximumf %15, %17 : vector<8x256xf32>
    %c0_12 = arith.constant 0 : index
    %c0_13 = arith.constant 0 : index
    %19 = vector.load %arg6[%c0_12, %c0_13] : memref<1x256xf32, #tpu.memory_space<vmem>>, vector<1x256xf32>
    %cst_14 = arith.constant dense<0.000000e+00> : vector<1x8xf32>
    %20 = tpu.matmul %19, %18, %cst_14 {dimension_numbers = #tpu.dot_dimension_numbers<[1], [1], [0], [0], [0, 0, 1, 0], [], []>} : vector<1x256xf32>, vector<8x256xf32>, vector<1x8xf32> -> vector<1x8xf32>
    %c0_15 = arith.constant 0 : index
    %21 = memref.load %arg7[%c0_15] : memref<1xf32, #tpu.memory_space<smem>>
    %22 = vector.broadcast %21 : f32 to vector<1x8xf32>
    %23 = arith.addf %20, %22 : vector<1x8xf32>
    %24 = arith.negf %23 : vector<1x8xf32>
    %25 = math.exp %24 : vector<1x8xf32>
    %cst_16 = arith.constant 1.000000e+00 : f32
    %26 = vector.broadcast %cst_16 : f32 to vector<1x8xf32>
    %27 = arith.addf %26, %25 : vector<1x8xf32>
    %28 = arith.divf %26, %27 : vector<1x8xf32>
    %29 = vector.shape_cast %28 : vector<1x8xf32> to vector<1x1x8xf32>
    %c0_17 = arith.constant 0 : index
    %c0_18 = arith.constant 0 : index
    %c0_19 = arith.constant 0 : index
    %30 = vector.load %arg8[%c0_17, %c0_18, %c0_19] : memref<1x1x8xf32, #tpu.memory_space<vmem>>, vector<1x1x8xf32>
    tpu.vector_store %arg8[%c0_17, %c0_18, %c0_19], %29 {strides = array<i32>} : memref<1x1x8xf32, #tpu.memory_space<vmem>>, vector<1x1x8xf32>,
    return
  }
  func.func @transform_0(%arg0: i32) -> (i32, i32) {
    %c0_i32 = arith.constant 0 : i32
    %c0_i32_0 = arith.constant 0 : i32
    return %arg0, %c0_i32 : i32, i32
  }
  func.func @transform_1(%arg0: i32) -> (i32, i32) {
    %c0_i32 = arith.constant 0 : i32
    %c0_i32_0 = arith.constant 0 : i32
    %c0_i32_1 = arith.constant 0 : i32
    return %c0_i32, %c0_i32_0 : i32, i32
  }
  func.func @transform_2(%arg0: i32) -> (i32, i32) {
    %c0_i32 = arith.constant 0 : i32
    %c0_i32_0 = arith.constant 0 : i32
    %c0_i32_1 = arith.constant 0 : i32
    return %c0_i32, %c0_i32_0 : i32, i32
  }
  func.func @transform_3(%arg0: i32) -> (i32, i32) {
    %c0_i32 = arith.constant 0 : i32
    %c0_i32_0 = arith.constant 0 : i32
    %c0_i32_1 = arith.constant 0 : i32
    return %c0_i32, %c0_i32_0 : i32, i32
  }
  func.func @transform_4(%arg0: i32) -> (i32, i32) {
    %c0_i32 = arith.constant 0 : i32
    %c0_i32_0 = arith.constant 0 : i32
    %c0_i32_1 = arith.constant 0 : i32
    return %c0_i32, %c0_i32_0 : i32, i32
  }
  func.func @transform_5(%arg0: i32) -> (i32, i32) {
    %c0_i32 = arith.constant 0 : i32
    %c0_i32_0 = arith.constant 0 : i32
    %c0_i32_1 = arith.constant 0 : i32
    return %c0_i32, %c0_i32_0 : i32, i32
  }
  func.func @transform_6(%arg0: i32) -> i32 {
    %c0_i32 = arith.constant 0 : i32
    %c0_i32_0 = arith.constant 0 : i32
    return %c0_i32 : i32
  }
  func.func @transform_7(%arg0: i32) -> (i32, i32, i32) {
    %c0_i32 = arith.constant 0 : i32
    %c0_i32_0 = arith.constant 0 : i32
    %c0_i32_1 = arith.constant 0 : i32
    return %arg0, %c0_i32, %c0_i32_0 : i32, i32, i32
  }
}

</mosaic_0001>

<bundles_post_ra>
// kernel: tpu_custom_call.1
= control target key start
LH: loop header
LB: loop body
LE: loop exit
PB: predicated region body
PF: predicated region fallthrough
CT: control target
= control target key end

     0   :  { %13 = vsyncpa [#allocation4], 0  ;;  %s1385_s0 = inlined_call_operand.hbm [shape: f32[8,32], index: 0, kind: input, shape index: {}]   ;;  %s1386_s1 = inlined_call_operand.hbm [shape: bf16[32,512], index: 1, kind: input, shape index: {}]   ;;  %s1387_s2 = inlined_call_operand.hbm [shape: f32[1,512], index: 2, kind: input, shape index: {}]   ;;  %s1388_s3 = inlined_call_operand.hbm [shape: bf16[512,256], index: 3, kind: input, shape index: {}]   ;;  %s1389_s4 = inlined_call_operand.vmem [shape: f32[1,256], index: 4, kind: input, shape index: {}]   ;;  %s1390_s5 = inlined_call_operand.vmem [shape: f32[1,256], index: 5, kind: input, shape index: {}]   ;;  %s1391_s6 = inlined_call_operand.<no memory space> [shape: f32[1], index: 6, kind: input, shape index: {}]   ;;  %s1392_s7 = inlined_call_operand.hbm [shape: f32[1,1,8], index: 7, kind: output, shape index: {}]  }
   0x1   :  { %14 = vsyncpa [#allocation7], 0 }
   0x2   :  { %15 = vsyncpa [#allocation10], 0  ;;  %s32_s26 = sshll.u32 %s1386_s1, 4  ;;  %s33_s26 = int_to_ptr.hbm [resolvable:$true] %s32_s26 }
   0x3   :  { %16 = vsyncpa [#allocation5], 0  ;;  %s1308_s27 = smov [#allocation6]   ;;  %s22_s8 = sshll.u32 %s1385_s0, 4  ;;  %s23_s8 = int_to_ptr.hbm [resolvable:$true] %s22_s8 }
   0x4   :  { %s34_s28 = sshll.u32 %s1308_s27, 4  ;;  %s1309_s9 = smov 256   ;;  %s35_s28 = int_to_ptr.vmem [resolvable:$true] %s34_s28 }
   0x5   :  { %s1310_s10 = smov 16   ;;  %s1311_s11 = smov [#allocation3]  }
   0x6   :  { %40 = dma.hbm_to_vmem [thread:$0]  %s33_s26, 1024, %s35_s28, [#allocation7], %s1309_s9, %s1309_s9, %s1310_s10  }
   0x7   :  { %s24_s12 = sshll.u32 %s1311_s11, 4  ;;  %s46_s15 = sshll.u32 %s1387_s2, 4  ;;  %s25_s12 = int_to_ptr.vmem [resolvable:$true] %s24_s12  ;;  %s47_s15 = int_to_ptr.hbm [resolvable:$true] %s46_s15 }
   0x8   :  { %27 = dma.hbm_to_vmem [thread:$0]  %s23_s8, 128, %s25_s12, [#allocation4]  }
   0x9   :  { %s56_s17 = sshll.u32 %s1388_s3, 4  ;;  %s1312_s18 = smov [#allocation8]   ;;  %s57_s17 = int_to_ptr.hbm [resolvable:$true] %s56_s17 }
   0xa   :  { %s48_s19 = sshll.u32 %s1312_s18, 4  ;;  %s1313_s0 = smov [#allocation9]   ;;  %s49_s19 = int_to_ptr.vmem [resolvable:$true] %s48_s19 }
   0xb   :  { %51 = dma.hbm_to_vmem [thread:$0]  %s47_s15, 64, %s49_s19, [#allocation7]  }
   0xc   :  { %s58_s20 = sshll.u32 %s1313_s0, 4  ;;  %s1314_s21 = smov 128   ;;  %s59_s20 = int_to_ptr.vmem [resolvable:$true] %s58_s20 }
   0xd   :  { %s1315_s22 = smov 8  }
   0xe   :  { %64 = dma.hbm_to_vmem [thread:$0]  %s57_s17, 8192, %s59_s20, [#allocation10], %s1314_s21, %s1314_s21, %s1315_s22  }
   0xf   :  { %1300 = dma.done.wait [#allocation4], 128  }
  0x10   :  { %1301 = vsyncadd [#allocation4], 4294967168 }
  0x11   :  { %1302 = dma.done.wait [#allocation7], 1088  }
  0x12   :  { %1303 = vsyncadd [#allocation7], 4294966208 }
  0x13   :  { %1304 = dma.done.wait [#allocation10], 8192  }
  0x14   :  { %1305 = vsyncadd [#allocation10], 4294959104  ;;  %v820_v0 = vld [vmem:[#allocation6 + $0x20] sm:$0xf]  ;;  %v1101_v1 = vld [vmem:[#allocation6 + $0x2c] sm:$0xf0] }
  0x15   :  { %v1099_v2 = vld [vmem:[#allocation6 + $0x24] sm:$0xf]  ;;  %v821_v3 = vor.u32 %v1101_v1, %v820_v0  ;;  %v822_v4 = vld [vmem:[#allocation6 + $0x30] sm:$0xf0]  ;;  %v828_v5 = vld [vmem:[#allocation6 + $0x28] sm:$0xf] }
  0x16   :  { %v1102_v6 = vld [vmem:[#allocation6 + $0x34] sm:$0xf0]  ;;  %v825_v7 = vor.u32 %v1099_v2, %v822_v4  ;;  %v1100_v9 = vld [vmem:[#allocation6 + $0x2c] sm:$0xf]  ;;  %v830_v10 = vld [vmem:[#allocation6 + $0x38] sm:$0xf0] }
  0x17   :  { %v829_v8 = vor.u32 %v1102_v6, %v828_v5  ;;  %v804_v11 = vld [vmem:[#allocation6] sm:$0xf]  ;;  %158 = vmatpush.bf16.msra.mxu0 %v821_v3  ;;  %v833_v12 = vor.u32 %v1100_v9, %v830_v10  ;;  %v1097_v13 = vld [vmem:[#allocation6 + $0xc] sm:$0xf0]  ;;  %v1095_v14 = vld [vmem:[#allocation6 + $0x4] sm:$0xf] }
  0x18   :  { %v806_v15 = vld [vmem:[#allocation6 + $0x10] sm:$0xf0]  ;;  %171 = vmatpush.bf16.msra.mxu1 %v825_v7  ;;  %v805_v16 = vor.u32 %v1097_v13, %v804_v11  ;;  %v812_v18 = vld [vmem:[#allocation6 + $0x8] sm:$0xf]  ;;  %v1098_v19 = vld [vmem:[#allocation6 + $0x14] sm:$0xf0] }
  0x19   :  { %184 = vmatpush.bf16.msra.mxu2 %v829_v8  ;;  %v809_v17 = vor.u32 %v1095_v14, %v806_v15  ;;  %v1096_v20 = vld [vmem:[#allocation6 + $0xc] sm:$0xf]  ;;  %197 = vmatpush.bf16.msra.mxu3 %v833_v12  ;;  %v813_v21 = vor.u32 %v1098_v19, %v812_v18  ;;  %v814_v22 = vld [vmem:[#allocation6 + $0x18] sm:$0xf0]  ;;  %vm148_vm0 = vcmask 261120   ;;  %s1316_s25 = smov [#allocation11]  }
  0x1a   :  { %v88_v23 = vld [vmem:[#allocation3] sm:$0xff]  ;;  %v896_v24 = vld [vmem:[#allocation9 + $0x70] sm:$0xf]  ;;  %v817_v25 = vor.u32 %v1096_v20, %v814_v22  ;;  %v888_v32 = vld [vmem:[#allocation9 + $0x60] sm:$0xf]  ;;  %s788_s26 = sshll.u32 %s1316_s25, 4  ;;  %s789_s26 = int_to_ptr.vmem [resolvable:$true] %s788_s26 }
  0x1b   :  { %v89_v26 = vpack.c.bf16 %v88_v23, %v88_v23  ;;  %v1118_v27 = vld [vmem:[#allocation9 + $0x74] sm:$0xf0]  ;;  %v960_v28 = vld [vmem:[#allocation9 + $0xf0] sm:$0xf]  ;;  %159 = vmatpush.bf16.msra.mxu0 %v805_v16  ;;  %v1116_v33 = vld [vmem:[#allocation9 + $0x64] sm:$0xf0] }
  0x1c   :  { %v1134_v29 = vld [vmem:[#allocation9 + $0xf4] sm:$0xf0]  ;;  %v897_v30 = vor.u32 %v1118_v27, %v896_v24  ;;  %v952_v34 = vld [vmem:[#allocation9 + $0xe0] sm:$0xf]  ;;  %172 = vmatpush.bf16.msra.mxu1 %v809_v17  ;;  %v1132_v35 = vld [vmem:[#allocation9 + $0xe4] sm:$0xf0]  ;;  %v889_v38 = vor.u32 %v1116_v33, %v888_v32 }
  0x1d   :  { %v961_v31 = vor.u32 %v1134_v29, %v960_v28  ;;  %185 = vmatpush.bf16.msra.mxu2 %v813_v21  ;;  %v1024_v36 = vld [vmem:[#allocation9 + $0x170] sm:$0xf]  ;;  %v1150_v37 = vld [vmem:[#allocation9 + $0x174] sm:$0xf0]  ;;  %198 = vmatpush.bf16.msra.mxu3 %v817_v25  ;;  %v953_v43 = vor.u32 %v1132_v35, %v952_v34  ;;  %v1016_v48 = vld [vmem:[#allocation9 + $0x160] sm:$0xf] }
  0x1e   :  { %v1025_v39 = vor.u32 %v1150_v37, %v1024_v36  ;;  %v1088_v40 = vld [vmem:[#allocation9 + $0x1f0] sm:$0xf]  ;;  %v1166_v41 = vld [vmem:[#allocation9 + $0x1f4] sm:$0xf0]  ;;  %834 = vmatmul.msk.bf16.vlgmr.msra.gmra.mxu0 %vm148_vm0, %v89_v26  ;;  %v1148_v49 = vld [vmem:[#allocation9 + $0x164] sm:$0xf0] }
  0x1f   :  { %606 = vmatpush.bf16.msrb.mxu0 %v897_v30  ;;  %v880_v42 = vld [vmem:[#allocation9 + $0x50] sm:$0xf]  ;;  %v1089_v44 = vor.u32 %v1166_v41, %v1088_v40  ;;  %v1114_v45 = vld [vmem:[#allocation9 + $0x54] sm:$0xf0]  ;;  %835 = vmatmul.msk.bf16.vlgmr.msra.gmra.mxu1 %vm148_vm0, %v89_v26  ;;  %v1080_v50 = vld [vmem:[#allocation9 + $0x1e0] sm:$0xf]  ;;  %v1017_v51 = vor.u32 %v1148_v49, %v1016_v48 }
  0x20   :  { %619 = vmatpush.bf16.msrb.mxu1 %v961_v31  ;;  %v944_v46 = vld [vmem:[#allocation9 + $0xd0] sm:$0xf]  ;;  %v1130_v47 = vld [vmem:[#allocation9 + $0xd4] sm:$0xf0]  ;;  %836 = vmatmul.msk.bf16.vlgmr.msra.gmra.mxu2 %vm148_vm0, %v89_v26  ;;  %v1164_v52 = vld [vmem:[#allocation9 + $0x1e4] sm:$0xf0]  ;;  %v881_v53 = vor.u32 %v1114_v45, %v880_v42 }
  0x21   :  { %837 = vmatmul.msk.bf16.vlgmr.msra.gmra.mxu3 %vm148_vm0, %v89_v26  ;;  %632 = vmatpush.bf16.msrb.mxu2 %v1025_v39  ;;  %v1081_v54 = vor.u32 %v1164_v52, %v1080_v50  ;;  %v872_v55 = vld [vmem:[#allocation9 + $0x40] sm:$0xf]  ;;  %v1112_v56 = vld [vmem:[#allocation9 + $0x44] sm:$0xf0]  ;;  %v1008_v57 = vld [vmem:[#allocation9 + $0x150] sm:$0xf]  ;;  %v945_v58 = vor.u32 %v1130_v47, %v944_v46 }
  0x22   :  { %645 = vmatpush.bf16.msrb.mxu3 %v1089_v44  ;;  %v1146_v59 = vld [vmem:[#allocation9 + $0x154] sm:$0xf0]  ;;  %v1072_v60 = vld [vmem:[#allocation9 + $0x1d0] sm:$0xf]  ;;  %v936_v62 = vld [vmem:[#allocation9 + $0xc0] sm:$0xf]  ;;  %v873_v1 = vor.u32 %v1112_v56, %v872_v55 }
  0x23   :  { %607 = vmatpush.bf16.msrb.mxu0 %v889_v38  ;;  %v1162_v61 = vld [vmem:[#allocation9 + $0x1d4] sm:$0xf0]  ;;  %v1128_v63 = vld [vmem:[#allocation9 + $0xc4] sm:$0xf0]  ;;  %v1009_v0 = vor.u32 %v1146_v59, %v1008_v57  ;;  %v864_v3 = vld [vmem:[#allocation9 + $0x30] sm:$0xf] }
  0x24   :  { %620 = vmatpush.bf16.msrb.mxu1 %v953_v43  ;;  %v1073_v2 = vor.u32 %v1162_v61, %v1072_v60  ;;  %v1000_v4 = vld [vmem:[#allocation9 + $0x140] sm:$0xf]  ;;  %v1144_v5 = vld [vmem:[#allocation9 + $0x144] sm:$0xf0]  ;;  %v937_v6 = vor.u32 %v1128_v63, %v936_v62  ;;  %v1110_v7 = vld [vmem:[#allocation9 + $0x34] sm:$0xf0] }
  0x25   :  { %633 = vmatpush.bf16.msrb.mxu2 %v1017_v51  ;;  %v1064_v8 = vld [vmem:[#allocation9 + $0x1c0] sm:$0xf]  ;;  %v1160_v9 = vld [vmem:[#allocation9 + $0x1c4] sm:$0xf0]  ;;  %v928_v10 = vld [vmem:[#allocation9 + $0xb0] sm:$0xf]  ;;  %v1001_v12 = vor.u32 %v1144_v5, %v1000_v4  ;;  %v865_v13 = vor.u32 %v1110_v7, %v864_v3 }
  0x26   :  { %646 = vmatpush.bf16.msrb.mxu3 %v1081_v54  ;;  %v1126_v11 = vld [vmem:[#allocation9 + $0xb4] sm:$0xf0]  ;;  %v1065_v14 = vor.u32 %v1160_v9, %v1064_v8  ;;  %v856_v15 = vld [vmem:[#allocation9 + $0x20] sm:$0xf]  ;;  %v992_v16 = vld [vmem:[#allocation9 + $0x130] sm:$0xf] }
  0x27   :  { %608 = vmatpush.bf16.msrb.mxu0 %v881_v53  ;;  %v1142_v17 = vld [vmem:[#allocation9 + $0x134] sm:$0xf0]  ;;  %v929_v18 = vor.u32 %v1126_v11, %v928_v10  ;;  %v1108_v19 = vld [vmem:[#allocation9 + $0x24] sm:$0xf0]  ;;  %v1056_v20 = vld [vmem:[#allocation9 + $0x1b0] sm:$0xf] }
  0x28   :  { %621 = vmatpush.bf16.msrb.mxu1 %v945_v58  ;;  %v1158_v21 = vld [vmem:[#allocation9 + $0x1b4] sm:$0xf0]  ;;  %v920_v22 = vld [vmem:[#allocation9 + $0xa0] sm:$0xf]  ;;  %v1124_v23 = vld [vmem:[#allocation9 + $0xa4] sm:$0xf0]  ;;  %v993_v24 = vor.u32 %v1142_v17, %v992_v16  ;;  %v857_v25 = vor.u32 %v1108_v19, %v856_v15 }
  0x29   :  { %634 = vmatpush.bf16.msrb.mxu2 %v1009_v0  ;;  %v1057_v26 = vor.u32 %v1158_v21, %v1056_v20  ;;  %v848_v27 = vld [vmem:[#allocation9 + $0x10] sm:$0xf]  ;;  %v984_v28 = vld [vmem:[#allocation9 + $0x120] sm:$0xf]  ;;  %v1140_v29 = vld [vmem:[#allocation9 + $0x124] sm:$0xf0]  ;;  %v921_v30 = vor.u32 %v1124_v23, %v920_v22 }
  0x2a   :  { %647 = vmatpush.bf16.msrb.mxu3 %v1073_v2  ;;  %v1106_v31 = vld [vmem:[#allocation9 + $0x14] sm:$0xf0]  ;;  %v1048_v32 = vld [vmem:[#allocation9 + $0x1a0] sm:$0xf]  ;;  %v1156_v33 = vld [vmem:[#allocation9 + $0x1a4] sm:$0xf0]  ;;  %v985_v36 = vor.u32 %v1140_v29, %v984_v28 }
  0x2b   :  { %609 = vmatpush.bf16.msrb.mxu0 %v873_v1  ;;  %v912_v34 = vld [vmem:[#allocation9 + $0x90] sm:$0xf]  ;;  %v1122_v35 = vld [vmem:[#allocation9 + $0x94] sm:$0xf0]  ;;  %v840_v37 = vld [vmem:[#allocation9] sm:$0xf]  ;;  %v849_v38 = vor.u32 %v1106_v31, %v848_v27  ;;  %v1049_v39 = vor.u32 %v1156_v33, %v1048_v32 }
  0x2c   :  { %622 = vmatpush.bf16.msrb.mxu1 %v937_v6  ;;  %v1104_v40 = vld [vmem:[#allocation9 + $0x4] sm:$0xf0]  ;;  %v976_v41 = vld [vmem:[#allocation9 + $0x110] sm:$0xf]  ;;  %v1138_v42 = vld [vmem:[#allocation9 + $0x114] sm:$0xf0]  ;;  %v913_v43 = vor.u32 %v1122_v35, %v912_v34 }
  0x2d   :  { %635 = vmatpush.bf16.msrb.mxu2 %v1001_v12  ;;  %v904_v44 = vld [vmem:[#allocation9 + $0x80] sm:$0xf]  ;;  %v1040_v45 = vld [vmem:[#allocation9 + $0x190] sm:$0xf]  ;;  %v1154_v46 = vld [vmem:[#allocation9 + $0x194] sm:$0xf0]  ;;  %v977_v52 = vor.u32 %v1138_v42, %v976_v41  ;;  %v841_v53 = vor.u32 %v1104_v40, %v840_v37 }
  0x2e   :  { %648 = vmatpush.bf16.msrb.mxu3 %v1065_v14  ;;  %v1120_v47 = vld [vmem:[#allocation9 + $0x84] sm:$0xf0]  ;;  %v1117_v48 = vld [vmem:[#allocation9 + $0x74] sm:$0xf]  ;;  %v898_v49 = vld [vmem:[#allocation9 + $0x78] sm:$0xf0]  ;;  %v1041_v54 = vor.u32 %v1154_v46, %v1040_v45 }
  0x2f   :  { %610 = vmatpush.bf16.msrb.mxu0 %v865_v13  ;;  %v1133_v50 = vld [vmem:[#allocation9 + $0xf4] sm:$0xf]  ;;  %v962_v51 = vld [vmem:[#allocation9 + $0xf8] sm:$0xf0]  ;;  %v968_v55 = vld [vmem:[#allocation9 + $0x100] sm:$0xf]  ;;  %v905_v57 = vor.u32 %v1120_v47, %v904_v44  ;;  %v901_v58 = vor.u32 %v1117_v48, %v898_v49 }
  0x30   :  { %623 = vmatpush.bf16.msrb.mxu1 %v929_v18  ;;  %v1136_v56 = vld [vmem:[#allocation9 + $0x104] sm:$0xf0]  ;;  %v1032_v59 = vld [vmem:[#allocation9 + $0x180] sm:$0xf]  ;;  %v965_v61 = vor.u32 %v1133_v50, %v962_v51  ;;  %v1115_v62 = vld [vmem:[#allocation9 + $0x64] sm:$0xf] }
  0x31   :  { %636 = vmatpush.bf16.msrb.mxu2 %v993_v24  ;;  %v1152_v60 = vld [vmem:[#allocation9 + $0x184] sm:$0xf0]  ;;  %v890_v63 = vld [vmem:[#allocation9 + $0x68] sm:$0xf0]  ;;  %v1131_v0 = vld [vmem:[#allocation9 + $0xe4] sm:$0xf]  ;;  %v969_v2 = vor.u32 %v1136_v56, %v968_v55 }
  0x32   :  { %649 = vmatpush.bf16.msrb.mxu3 %v1057_v26  ;;  %v954_v1 = vld [vmem:[#allocation9 + $0xe8] sm:$0xf0]  ;;  %v1033_v3 = vor.u32 %v1152_v60, %v1032_v59  ;;  %v893_v4 = vor.u32 %v1115_v62, %v890_v63  ;;  %v1149_v6 = vld [vmem:[#allocation9 + $0x174] sm:$0xf]  ;;  %v1026_v7 = vld [vmem:[#allocation9 + $0x178] sm:$0xf0] }
  0x33   :  { %611 = vmatpush.bf16.msrb.mxu0 %v857_v25  ;;  %v957_v5 = vor.u32 %v1131_v0, %v954_v1  ;;  %v1165_v8 = vld [vmem:[#allocation9 + $0x1f4] sm:$0xf]  ;;  %v1029_v9 = vor.u32 %v1149_v6, %v1026_v7  ;;  %v1090_v10 = vld [vmem:[#allocation9 + $0x1f8] sm:$0xf0]  ;;  %v1147_v18 = vld [vmem:[#allocation9 + $0x164] sm:$0xf] }
  0x34   :  { %624 = vmatpush.bf16.msrb.mxu1 %v921_v30  ;;  %v1093_v11 = vor.u32 %v1165_v8, %v1090_v10  ;;  %v1113_v12 = vld [vmem:[#allocation9 + $0x54] sm:$0xf]  ;;  %v882_v13 = vld [vmem:[#allocation9 + $0x58] sm:$0xf0]  ;;  %v1018_v19 = vld [vmem:[#allocation9 + $0x168] sm:$0xf0] }
  0x35   :  { %637 = vmatpush.bf16.msrb.mxu2 %v985_v36  ;;  %v885_v14 = vor.u32 %v1113_v12, %v882_v13  ;;  %v1129_v15 = vld [vmem:[#allocation9 + $0xd4] sm:$0xf]  ;;  %v946_v16 = vld [vmem:[#allocation9 + $0xd8] sm:$0xf0]  ;;  %v1163_v20 = vld [vmem:[#allocation9 + $0x1e4] sm:$0xf]  ;;  %v1021_v21 = vor.u32 %v1147_v18, %v1018_v19 }
  0x36   :  { %650 = vmatpush.bf16.msrb.mxu3 %v1049_v39  ;;  %v949_v17 = vor.u32 %v1129_v15, %v946_v16  ;;  %v1082_v22 = vld [vmem:[#allocation9 + $0x1e8] sm:$0xf0]  ;;  %v1111_v24 = vld [vmem:[#allocation9 + $0x44] sm:$0xf]  ;;  %v1145_v30 = vld [vmem:[#allocation9 + $0x154] sm:$0xf] }
  0x37   :  { %612 = vmatpush.bf16.msrb.mxu0 %v849_v38  ;;  %v1085_v23 = vor.u32 %v1163_v20, %v1082_v22  ;;  %v874_v25 = vld [vmem:[#allocation9 + $0x48] sm:$0xf0]  ;;  %v1127_v26 = vld [vmem:[#allocation9 + $0xc4] sm:$0xf]  ;;  %v1010_v31 = vld [vmem:[#allocation9 + $0x158] sm:$0xf0] }
  0x38   :  { %625 = vmatpush.bf16.msrb.mxu1 %v913_v43  ;;  %v877_v27 = vor.u32 %v1111_v24, %v874_v25  ;;  %v938_v28 = vld [vmem:[#allocation9 + $0xc8] sm:$0xf0]  ;;  %v1013_v32 = vor.u32 %v1145_v30, %v1010_v31  ;;  %v1161_v33 = vld [vmem:[#allocation9 + $0x1d4] sm:$0xf]  ;;  %v1074_v34 = vld [vmem:[#allocation9 + $0x1d8] sm:$0xf0] }
  0x39   :  { %638 = vmatpush.bf16.msrb.mxu2 %v977_v52  ;;  %v941_v29 = vor.u32 %v1127_v26, %v938_v28  ;;  %v1077_v35 = vor.u32 %v1161_v33, %v1074_v34  ;;  %v1109_v36 = vld [vmem:[#allocation9 + $0x34] sm:$0xf]  ;;  %v866_v37 = vld [vmem:[#allocation9 + $0x38] sm:$0xf0]  ;;  %v1143_v42 = vld [vmem:[#allocation9 + $0x144] sm:$0xf] }
  0x3a   :  { %651 = vmatpush.bf16.msrb.mxu3 %v1041_v54  ;;  %v1125_v38 = vld [vmem:[#allocation9 + $0xb4] sm:$0xf]  ;;  %v869_v39 = vor.u32 %v1109_v36, %v866_v37  ;;  %v930_v40 = vld [vmem:[#allocation9 + $0xb8] sm:$0xf0]  ;;  %v1002_v43 = vld [vmem:[#allocation9 + $0x148] sm:$0xf0] }
  0x3b   :  { %613 = vmatpush.bf16.msrb.mxu0 %v841_v53  ;;  %v933_v41 = vor.u32 %v1125_v38, %v930_v40  ;;  %v1159_v44 = vld [vmem:[#allocation9 + $0x1c4] sm:$0xf]  ;;  %v1005_v45 = vor.u32 %v1143_v42, %v1002_v43  ;;  %v1066_v46 = vld [vmem:[#allocation9 + $0x1c8] sm:$0xf0]  ;;  %v1141_v54 = vld [vmem:[#allocation9 + $0x134] sm:$0xf] }
  0x3c   :  { %626 = vmatpush.bf16.msrb.mxu1 %v905_v57  ;;  %v1069_v47 = vor.u32 %v1159_v44, %v1066_v46  ;;  %v1107_v48 = vld [vmem:[#allocation9 + $0x24] sm:$0xf]  ;;  %v858_v49 = vld [vmem:[#allocation9 + $0x28] sm:$0xf0]  ;;  %v994_v55 = vld [vmem:[#allocation9 + $0x138] sm:$0xf0] }
  0x3d   :  { %639 = vmatpush.bf16.msrb.mxu2 %v969_v2  ;;  %v1123_v50 = vld [vmem:[#allocation9 + $0xa4] sm:$0xf]  ;;  %v861_v51 = vor.u32 %v1107_v48, %v858_v49  ;;  %v922_v52 = vld [vmem:[#allocation9 + $0xa8] sm:$0xf0]  ;;  %v1157_v56 = vld [vmem:[#allocation9 + $0x1b4] sm:$0xf]  ;;  %v997_v57 = vor.u32 %v1141_v54, %v994_v55 }
  0x3e   :  { %652 = vmatpush.bf16.msrb.mxu3 %v1033_v3  ;;  %v925_v53 = vor.u32 %v1123_v50, %v922_v52  ;;  %v1105_v60 = vld [vmem:[#allocation9 + $0x14] sm:$0xf]  ;;  %v914_v0 = vld [vmem:[#allocation9 + $0x98] sm:$0xf0]  ;;  %v1139_v1 = vld [vmem:[#allocation9 + $0x124] sm:$0xf] }
  0x3f   :  { %658 = vmatpush.bf16.msra.mxu0 %v901_v58  ;;  %v1058_v58 = vld [vmem:[#allocation9 + $0x1b8] sm:$0xf0]  ;;  %v1121_v62 = vld [vmem:[#allocation9 + $0x94] sm:$0xf]  ;;  %v986_v2 = vld [vmem:[#allocation9 + $0x128] sm:$0xf0] }
  0x40   :  { %671 = vmatpush.bf16.msra.mxu1 %v965_v61  ;;  %v1061_v59 = vor.u32 %v1157_v56, %v1058_v58  ;;  %v850_v61 = vld [vmem:[#allocation9 + $0x18] sm:$0xf0]  ;;  %v917_v3 = vor.u32 %v1121_v62, %v914_v0  ;;  %v1050_v6 = vld [vmem:[#allocation9 + $0x1a8] sm:$0xf0]  ;;  %v1103_v7 = vld [vmem:[#allocation9 + $0x4] sm:$0xf] }
  0x41   :  { %684 = vmatpush.bf16.msra.mxu2 %v1029_v9  ;;  %v853_v63 = vor.u32 %v1105_v60, %v850_v61  ;;  %v842_v9 = vld [vmem:[#allocation9 + $0x8] sm:$0xf0]  ;;  %v1119_v10 = vld [vmem:[#allocation9 + $0x84] sm:$0xf]  ;;  %v978_v15 = vld [vmem:[#allocation9 + $0x118] sm:$0xf0] }
  0x42   :  { %697 = vmatpush.bf16.msra.mxu3 %v1093_v11  ;;  %v906_v11 = vld [vmem:[#allocation9 + $0x88] sm:$0xf0]  ;;  %v845_v12 = vor.u32 %v1103_v7, %v842_v9  ;;  %v1153_v16 = vld [vmem:[#allocation9 + $0x194] sm:$0xf]  ;;  %v1042_v18 = vld [vmem:[#allocation9 + $0x198] sm:$0xf0] }
  0x43   :  { %659 = vmatpush.bf16.msra.mxu0 %v893_v4  ;;  %v989_v4 = vor.u32 %v1139_v1, %v986_v2  ;;  %v909_v13 = vor.u32 %v1119_v10, %v906_v11  ;;  %v1045_v19 = vor.u32 %v1153_v16, %v1042_v18  ;;  %v98_v20 = vld [vmem:[#allocation8] sm:$0xf]  ;;  %v970_v22 = vld [vmem:[#allocation9 + $0x108] sm:$0xf0]  ;;  %v280_v56 = vld [vmem:[%s1389_s4] sm:$0x3] }
  0x44   :  { %672 = vmatpush.bf16.msra.mxu1 %v957_v5  ;;  %v1155_v5 = vld [vmem:[#allocation9 + $0x1a4] sm:$0xf]  ;;  %v1034_v25 = vld [vmem:[#allocation9 + $0x188] sm:$0xf0]  ;;  %v101_v28 = vperm.slane %v98_v20, 1  ;;  %v103_v37 = vperm.slane %v98_v20, 3 }
  0x45   :  { %685 = vmatpush.bf16.msra.mxu2 %v1021_v21  ;;  %v1053_v8 = vor.u32 %v1155_v5, %v1050_v6  ;;  %v1135_v21 = vld [vmem:[#allocation9 + $0x104] sm:$0xf]  ;;  %v282_v58 = vperm.slane %v280_v56, 0  ;;  %v714_v6 = vld [vmem:[%s1390_s5] sm:$0x3]  ;;  %s790_s28 = sshll.u32 %s1392_s7, 4  ;;  %s791_s28 = int_to_ptr.hbm [resolvable:$true] %s790_s28 }
  0x46   :  { %698 = vmatpush.bf16.msra.mxu3 %v1085_v23  ;;  %v1151_v23 = vld [vmem:[#allocation9 + $0x184] sm:$0xf]  ;;  %v973_v24 = vor.u32 %v1135_v21, %v970_v22  ;;  %v718_v10 = vperm.slane %v714_v6, 0  ;;  %vm781_vm4 = vcmask 57344  }
  0x47   :  { %660 = vmatpush.bf16.msra.mxu0 %v885_v14  ;;  %v1137_v14 = vld [vmem:[#allocation9 + $0x114] sm:$0xf]  ;;  %v1037_v26 = vor.u32 %v1151_v23, %v1034_v25  ;;  %v719_v23 = vperm.slane %v714_v6, 1  ;;  %v716_v25 = vstv %s1391_s6 }
  0x48   :  { %673 = vmatpush.bf16.msra.mxu1 %v949_v17  ;;  %v981_v17 = vor.u32 %v1137_v14, %v978_v15 }
  0x49   :  { %686 = vmatpush.bf16.msra.mxu2 %v1013_v32 }
  0x4a   :  { %699 = vmatpush.bf16.msra.mxu3 %v1077_v35  ;;  %v102_v35 = vperm.slane %v98_v20, 2 }
  0x4b   :  { %661 = vmatpush.bf16.msra.mxu0 %v877_v27  ;;  %v100_v27 = vperm.slane %v98_v20, 0 }
  0x4c   :  { %674 = vmatpush.bf16.msra.mxu1 %v941_v29 }
  0x4d   :  { %687 = vmatpush.bf16.msra.mxu2 %v1005_v45 }
  0x4e   :  { %700 = vmatpush.bf16.msra.mxu3 %v1069_v47 }
  0x4f   :  { %662 = vmatpush.bf16.msra.mxu0 %v869_v39 }
  0x50   :  { %675 = vmatpush.bf16.msra.mxu1 %v933_v41 }
  0x51   :  { %688 = vmatpush.bf16.msra.mxu2 %v997_v57 }
  0x52   :  { %701 = vmatpush.bf16.msra.mxu3 %v1061_v59 }
  0x53   :  { %663 = vmatpush.bf16.msra.mxu0 %v861_v51 }
  0x54   :  { %676 = vmatpush.bf16.msra.mxu1 %v925_v53 }
  0x55   :  { %689 = vmatpush.bf16.msra.mxu2 %v989_v4 }
  0x56   :  { %702 = vmatpush.bf16.msra.mxu3 %v1053_v8  ;;  %v283_v8 = vperm.slane %v280_v56, 1 }
  0x57   :  { %664 = vmatpush.bf16.msra.mxu0 %v853_v63 }
  0x58   :  { %677 = vmatpush.bf16.msra.mxu1 %v917_v3 }
  0x59   :  { %690 = vmatpush.bf16.msra.mxu2 %v981_v17 }
  0x5a   :  { %703 = vmatpush.bf16.msra.mxu3 %v1045_v19 }
  0x5b   :  { %665 = vmatpush.bf16.msra.mxu0 %v845_v12 }
  0x5c   :  { %678 = vmatpush.bf16.msra.mxu1 %v909_v13 }
  0x5d   :  { %691 = vmatpush.bf16.msra.mxu2 %v973_v24 }
  0x5e   :  { %704 = vmatpush.bf16.msra.mxu3 %v1037_v26 }
  0x9b   :  { %v161_v29 = vpop.f32.mrf.mxu0 }
  0x9c   :  { %v162_v30 = vadd.f32 %v161_v29, %v100_v27  ;;  %v174_v31 = vpop.f32.mrf.mxu1 }
  0x9d   :  { %v175_v32 = vadd.f32 %v174_v31, %v101_v28 }
  0x9e   :  { %v204_v33 = vmul.f32 0.2, %v162_v30 }
  0x9f   :  { %v205_v34 = vmul.f32 0.2, %v175_v32 }
  0xa0   :  { %v208_v36 = vmax.f32 %v162_v30, %v204_v33 }
  0xa1   :  { %v209_v38 = vmax.f32 %v175_v32, %v205_v34 }
  0xa2   :  { %v212_v39 = vpack.c.bf16 %v208_v36, %v208_v36 }
  0xa3   :  { %v187_v40 = vpop.f32.mrf.mxu2  ;;  %v213_v41 = vpack.c.bf16 %v209_v38, %v209_v38  ;;  %v163_v44 = vpop.f32.mrf.mxu0 }
  0xa4   :  { %v188_v42 = vadd.f32 %v187_v40, %v102_v35  ;;  %v200_v43 = vpop.f32.mrf.mxu3  ;;  %614 = vmatmul.bf16.vlgmr.msrb.gmra.mxu0 %v212_v39  ;;  %v176_v46 = vpop.f32.mrf.mxu1 }
  0xa5   :  { %v201_v45 = vadd.f32 %v200_v43, %v103_v37  ;;  %627 = vmatmul.bf16.vlgmr.msrb.gmra.mxu1 %v213_v41 }
  0xa6   :  { %v206_v47 = vmul.f32 0.2, %v188_v42 }
  0xa7   :  { %v207_v48 = vmul.f32 0.2, %v201_v45 }
  0xa8   :  { %v210_v49 = vmax.f32 %v188_v42, %v206_v47 }
  0xa9   :  { %v211_v50 = vmax.f32 %v201_v45, %v207_v48 }
  0xaa   :  { %v214_v51 = vpack.c.bf16 %v210_v49, %v210_v49 }
  0xab   :  { %v215_v52 = vpack.c.bf16 %v211_v50, %v211_v50  ;;  %v189_v53 = vpop.f32.mrf.mxu2 }
  0xac   :  { %v202_v54 = vpop.f32.mrf.mxu3  ;;  %640 = vmatmul.bf16.vlgmr.msrb.gmra.mxu2 %v214_v51 }
  0xad   :  { %653 = vmatmul.bf16.vlgmr.msrb.gmra.mxu3 %v215_v52 }
  0xb4   :  { %666 = vmatmul.bf16.vlgmr.msra.gmra.mxu0 %v212_v39 }
  0xb5   :  { %679 = vmatmul.bf16.vlgmr.msra.gmra.mxu1 %v213_v41 }
  0xbc   :  { %692 = vmatmul.bf16.vlgmr.msra.gmra.mxu2 %v214_v51 }
  0xbd   :  { %705 = vmatmul.bf16.vlgmr.msra.gmra.mxu3 %v215_v52 }
 0x121   :  { %v615_v55 = vpop.f32.mrf.mxu0 }
 0x122   :  { %v628_v57 = vpop.f32.mrf.mxu1  ;;  %v616_v59 = vadd.f32 %v615_v55, %v282_v58 }
 0x124   :  { %v629_v62 = vadd.f32 %v628_v57, %v616_v59 }
 0x129   :  { %v617_v60 = vpop.f32.mrf.mxu0 }
 0x12a   :  { %v630_v61 = vpop.f32.mrf.mxu1 }
 0x12f   :  { %v641_v63 = vpop.f32.mrf.mxu2 }
 0x130   :  { %v642_v0 = vadd.f32 %v641_v63, %v629_v62  ;;  %v654_v1 = vpop.f32.mrf.mxu3 }
 0x131   :  { %v667_v3 = vpop.f32.mrf.mxu0 }
 0x132   :  { %v655_v2 = vadd.f32 %v654_v1, %v642_v0  ;;  %v680_v4 = vpop.f32.mrf.mxu1  ;;  %v668_v12 = vadd.f32 %v667_v3, %v283_v8 }
 0x134   :  { %v710_v5 = vmul.f32 0.2, %v655_v2  ;;  %v681_v15 = vadd.f32 %v680_v4, %v668_v12 }
 0x136   :  { %v712_v7 = vmax.f32 %v655_v2, %v710_v5 }
 0x137   :  { %v643_v9 = vpop.f32.mrf.mxu2 }
 0x138   :  { %v656_v11 = vpop.f32.mrf.mxu3  ;;  %737 = vmatpush.xpose.msrb.mxu0 %v712_v7 }
 0x139   :  { %v669_v13 = vpop.f32.mrf.mxu0 }
 0x13a   :  { %v682_v14 = vpop.f32.mrf.mxu1 }
 0x13b   :  { %738 = vmatmul.f32.vlgmr.msrb.gmra.mxu0 %v718_v10 }
 0x13f   :  { %v693_v16 = vpop.f32.mrf.mxu2 }
 0x140   :  { %v694_v17 = vadd.f32 %v693_v16, %v681_v15  ;;  %v706_v18 = vpop.f32.mrf.mxu3 }
 0x142   :  { %v707_v19 = vadd.f32 %v706_v18, %v694_v17 }
 0x144   :  { %v711_v20 = vmul.f32 0.2, %v707_v19 }
 0x146   :  { %v713_v21 = vmax.f32 %v707_v19, %v711_v20 }
 0x147   :  { %v695_v22 = vpop.f32.mrf.mxu2 }
 0x148   :  { %v708_v24 = vpop.f32.mrf.mxu3  ;;  %757 = vmatpush.xpose.msrb.mxu1 %v713_v21 }
 0x14b   :  { %758 = vmatmul.f32.vlgmr.msrb.gmra.mxu1 %v719_v23 }
 0x1b8   :  { %v739_v26 = vpop.f32.mrf.mxu0 }
 0x1b9   :  { %v740_v27 = vadd.f32 %v739_v26, %v716_v25 }
 0x1c8   :  { %v759_v28 = vpop.f32.mrf.mxu1 }
 0x1c9   :  { %v760_v29 = vadd.f32 %v759_v28, %v740_v27 }
 0x1cb   :  { %v1094_v30 = vmul.f32 -1.442695, %v760_v29 }
 0x1cd   :  { %1176 = vpow2.f32 %v1094_v30 }
 0x1d3   :  { %v1177_v31 = vpop.eup %1176 }
 0x1d4   :  { %v765_v32 = vadd.f32 1.0, %v1177_v31 }
 0x1d6   :  { %1178 = vrcp.f32 %v765_v32  ;;  %v777_v36 = vand.u32 2147483648, %v765_v32  ;;  %v775_v38 = vand.u32 2147483647, %v765_v32  ;;  %vm771_vm2 = vweird.f32 %v765_v32 }
 0x1d8   :  { %v778_v40 = vor.u32 1.1754944e-38, %v777_v36  ;;  %vm776_vm5 = vcmp.eq.f32.partialorder %v775_v38, 8.507059e+37 }
 0x1dc   :  { %v1179_v33 = vpop.eup %1178 }
 0x1dd   :  { %v767_v34 = vmul.f32 %v1179_v33, %v765_v32  ;;  %vm772_vm1 = vweird.f32 %v1179_v33 }
 0x1de   :  { %vm773_vm3 = vmor %vm771_vm2, %vm772_vm1 }
 0x1df   :  { %v768_v35 = vsub.f32 1.0, %v767_v34 }
 0x1e1   :  { %v769_v37 = vmul.f32 %v1179_v33, %v768_v35 }
 0x1e3   :  { %v770_v39 = vadd.f32 %v1179_v33, %v769_v37 }
 0x1e5   :  { %v774_v41 = vsel %vm773_vm3, %v1179_v33, %v770_v39 }
 0x1e6   :  { %v779_v42 = vsel %vm776_vm5, %v778_v40, %v774_v41 }
 0x1e7   :  { %782 = vst.msk [vmem:[#allocation11] sm:$0x1] %vm781_vm4, %v779_v42 }
 0x1e8   :  { %793 = dma.vmem_to_hbm [thread:$0]  %s789_s26, 16, %s791_s28, [#allocation5]  }
 0x1e9   :  { %1306 = dma.done.wait [#allocation5], 16  }
 0x1ea   :  { %1307 = vsyncadd [#allocation5], 4294967280 }
 0x1eb   :  { %798 = vsyncpa [#allocation4], 1 }
 0x1ec   :  { %799 = vsyncpa [#allocation7], 1 }
 0x1ed   :  { %800 = vsyncpa [#allocation10], 1 }
 0x1ee   :  { %801 = vsyncpa [#allocation5], 1 }

</bundles_post_ra>
